<compile_context>
chip_gen: v5e
topology: v5e:2x2
jax: 0.10.0
libtpu: 0.0.40
codegen_flags: <defaults>
</compile_context>

<pallas_src>
import functools

import jax
import jax.numpy as jnp
from jax.experimental import pallas as pl
from jax.experimental.pallas import tpu as pltpu

HIDDEN = 256
BN_EPS = 1e-5
LANE = 128


def actor_kernel(x_ref, w1_ref, vec_ref, w2_ref, w3_ref, out_ref, *, n, batch):
    """Single invocation over the whole stacked problem.

    x_ref  : [n*B, s_pad]  bf16   (n independent BatchNorm batches, flattened)
    w1_ref : [s_pad, 256]  bf16
    vec_ref: [4, W]        f32    rows = (gamma, beta, b2, b3_padded)
    w2_ref : [256, 256]    bf16
    w3_ref : [256, a_pad]  bf16
    out_ref: [n*B, a_pad]  f32
    """
    a_pad = out_ref.shape[-1]

    # fc1 (no bias: the per-feature bias cancels exactly under train-mode BN)
    x = x_ref[...]
    h1 = jnp.dot(x, w1_ref[...], preferred_element_type=jnp.float32)      # [n*B, 256] f32

    gamma = vec_ref[0:1, :HIDDEN]                                          # [1, 256]
    beta = vec_ref[1:2, :HIDDEN]
    b2 = vec_ref[2:3, :HIDDEN]
    b3 = vec_ref[3:4, :a_pad]                                              # [1, a_pad]

    # BatchNorm1d (training mode, biased batch stats), computed per-slice of B rows.
    # With f32 and B=8 each slice is exactly one sublane group -> clean sublane reduce.
    h1_3d = h1.reshape(n, batch, HIDDEN)                                   # [n, B, 256]
    mean = jnp.mean(h1_3d, axis=1, keepdims=True)                          # [n, 1, 256]
    mean_sq = jnp.mean(h1_3d * h1_3d, axis=1, keepdims=True)
    var = jnp.maximum(mean_sq - mean * mean, 0.0)                          # clamp cancellation
    scale = gamma * jax.lax.rsqrt(var + BN_EPS)                            # [n, 1, 256]
    shift = beta - mean * scale
    h1r = jnp.maximum(h1_3d * scale + shift, 0.0)                          # fused BN + ReLU
    h1r = h1r.reshape(n * batch, HIDDEN)

    # fc2 + ReLU (bf16 operands, f32 accumulation, f32 elementwise)
    h2 = jnp.dot(h1r.astype(jnp.bfloat16), w2_ref[...],
                 preferred_element_type=jnp.float32) + b2
    h2 = jnp.maximum(h2, 0.0)

    # fc3 + tanh (output lane-padded to 128; extra columns are tanh(0)=0)
    h3 = jnp.dot(h2.astype(jnp.bfloat16), w3_ref[...],
                 preferred_element_type=jnp.float32) + b3
    out_ref[...] = jnp.tanh(h3)


@jax.jit
def actor_forward_stacked(x, w1, gamma, beta, w2, b2, w3, b3):
    """x: [N, B, state_size]; each of the N slices is an independent BN batch.
    Returns [N, B, action_size] f32. One pallas_call for the whole problem."""
    n, batch, state = x.shape
    action = w3.shape[1]
    s_pad = state + (-state) % LANE
    a_pad = action + (-action) % LANE
    width = max(HIDDEN, a_pad)

    # Flatten the stacked batches for the matmuls; lane-dense zero padding is an
    # exact no-op in the dots. bf16 operands for the MXU.
    x_flat = jnp.pad(x.reshape(n * batch, state),
                     ((0, 0), (0, s_pad - state))).astype(jnp.bfloat16)
    w1_p = jnp.pad(w1, ((0, s_pad - state), (0, 0))).astype(jnp.bfloat16)
    w2_b = w2.astype(jnp.bfloat16)
    w3_p = jnp.pad(w3, ((0, 0), (0, a_pad - action))).astype(jnp.bfloat16)

    def _row(v):
        v = v.reshape(1, -1).astype(jnp.float32)
        return jnp.pad(v, ((0, 0), (0, width - v.shape[1])))

    # Coalesce the four tiny per-feature vectors into one array (one DMA/buffer).
    vec = jnp.concatenate([_row(gamma), _row(beta), _row(b2), _row(b3)], axis=0)

    vmem = pl.BlockSpec(memory_space=pltpu.MemorySpace.VMEM)
    out = pl.pallas_call(
        functools.partial(actor_kernel, n=n, batch=batch),
        out_shape=jax.ShapeDtypeStruct((n * batch, a_pad), jnp.float32),
        in_specs=[vmem, vmem, vmem, vmem, vmem],
        out_specs=vmem,
    )(x_flat, w1_p, vec, w2_b, w3_p)

    return out[:, :action].reshape(n, batch, action)


def actor_forward(x, w1, gamma, beta, w2, b2, w3, b3):
    """Module-equivalent single-batch call: x [B, state_size] -> [B, action_size]."""
    return actor_forward_stacked(x[None], w1, gamma, beta, w2, b2, w3, b3)[0]


def init_params(key, state_size, action_size):
    """Deterministic synthetic init mirroring Actor.reset_parameters().

    NOTE: hidden_init uses weight.size()[0] == out_features (256) as 'fan_in',
    matching the original code's behavior exactly. Weights are stored as
    [in_features, out_features] (pre-transposed vs torch).
    """
    ks = jax.random.split(key, 6)
    lim1 = 1.0 / jnp.sqrt(256.0)
    lim2 = 1.0 / jnp.sqrt(256.0)
    w1 = jax.random.uniform(ks[0], (state_size, HIDDEN), jnp.float32, -lim1, lim1)
    w2 = jax.random.uniform(ks[1], (HIDDEN, HIDDEN), jnp.float32, -lim2, lim2)
    w3 = jax.random.uniform(ks[2], (HIDDEN, action_size), jnp.float32, -0.003, 0.003)
    # biases keep torch's default Linear init: U(-1/sqrt(in_f), 1/sqrt(in_f))
    b1 = jax.random.uniform(ks[3], (1, HIDDEN), jnp.float32,
                            -1.0 / jnp.sqrt(state_size), 1.0 / jnp.sqrt(state_size))
    b2 = jax.random.uniform(ks[4], (1, HIDDEN), jnp.float32,
                            -1.0 / jnp.sqrt(HIDDEN), 1.0 / jnp.sqrt(HIDDEN))
    b3 = jax.random.uniform(ks[5], (1, action_size), jnp.float32,
                            -1.0 / jnp.sqrt(HIDDEN), 1.0 / jnp.sqrt(HIDDEN))
    gamma = jnp.ones((1, HIDDEN), jnp.float32)
    beta = jnp.zeros((1, HIDDEN), jnp.float32)
    return w1, b1, gamma, beta, w2, b2, w3, b3


def reference_forward_f32(x, w1, b1, gamma, beta, w2, b2, w3, b3):
    """Exact module math in f32 (includes the fc1 bias, which train-mode BN cancels)."""
    h1 = x @ w1 + b1
    mean = jnp.mean(h1, axis=0, keepdims=True)
    var = jnp.mean((h1 - mean) ** 2, axis=0, keepdims=True)
    h1 = jnp.maximum((h1 - mean) / jnp.sqrt(var + BN_EPS) * gamma + beta, 0.0)
    h2 = jnp.maximum(h1 @ w2 + b2, 0.0)
    return jnp.tanh(h2 @ w3 + b3)


def reference_forward_bf16(x, w1, gamma, beta, w2, b2, w3, b3):
    """Mirrors the kernel's arithmetic (bf16 operands, f32 accumulation)."""
    h1 = jnp.dot(x.astype(jnp.bfloat16), w1.astype(jnp.bfloat16),
                 preferred_element_type=jnp.float32)
    mean = jnp.mean(h1, axis=0, keepdims=True)
    var = jnp.maximum(jnp.mean(h1 * h1, axis=0, keepdims=True) - mean * mean, 0.0)
    scale = gamma * jax.lax.rsqrt(var + BN_EPS)
    shift = beta - mean * scale
    h1 = jnp.maximum(h1 * scale + shift, 0.0)
    h2 = jnp.maximum(jnp.dot(h1.astype(jnp.bfloat16), w2.astype(jnp.bfloat16),
                             preferred_element_type=jnp.float32) + b2, 0.0)
    h3 = jnp.dot(h2.astype(jnp.bfloat16), w3.astype(jnp.bfloat16),
                 preferred_element_type=jnp.float32) + b3
    return jnp.tanh(h3)


if __name__ == "__main__":
    key = jax.random.PRNGKey(0)
    k_x, k_p = jax.random.split(key)

    num_batches, batch, state_size, action_size = 4, 8, 32, 4
    x = jax.random.normal(k_x, (num_batches, batch, state_size), jnp.float32)
    w1, b1, gamma, beta, w2, b2, w3, b3 = init_params(k_p, state_size, action_size)

    # Stacked path: 4 independent BN batches handled in ONE kernel invocation.
    out = actor_forward_stacked(x, w1, gamma, beta, w2, b2, w3, b3)
    out = jax.block_until_ready(out)
    assert out.shape == (num_batches, batch, action_size)

    # Module-equivalent single-batch path.
    out1 = jax.block_until_ready(actor_forward(x[0], w1, gamma, beta, w2, b2, w3, b3))
    assert out1.shape == (batch, action_size)
    assert jnp.allclose(out1, out[0], atol=1e-5, rtol=1e-5)

    # Tight check vs a reference mirroring the kernel's bf16/f32 arithmetic.
    ref_bf16 = jax.vmap(
        lambda xb: reference_forward_bf16(xb, w1, gamma, beta, w2, b2, w3, b3))(x)
    assert jnp.allclose(out, ref_bf16, atol=2e-3, rtol=2e-3)

    # Looser check vs the exact f32 module math (bf16 operand rounding only).
    ref_f32 = jax.vmap(
        lambda xb: reference_forward_f32(xb, w1, b1, gamma, beta, w2, b2, w3, b3))(x)
    assert jnp.allclose(out, ref_f32, atol=5e-2, rtol=5e-2)

    print("KERNEL_OK")
</pallas_src>

<mosaic_0001>
module attributes {stable_mosaic.version = 11 : i64} {
  func.func @actor_kernel(%arg0: memref<32x128xbf16, #tpu.memory_space<vmem>>, %arg1: memref<128x256xbf16, #tpu.memory_space<vmem>>, %arg2: memref<4x256xf32, #tpu.memory_space<vmem>>, %arg3: memref<256x256xbf16, #tpu.memory_space<vmem>>, %arg4: memref<256x128xbf16, #tpu.memory_space<vmem>>, %arg5: memref<32x128xf32, #tpu.memory_space<vmem>>) attributes {dimension_semantics = [], scalar_prefetch = 0 : i64, scratch_operands = 0 : i64, tpu.core_type = #tpu.core_type<tc>} {
    %c0 = arith.constant 0 : index
    %c0_0 = arith.constant 0 : index
    %0 = vector.load %arg0[%c0, %c0_0] : memref<32x128xbf16, #tpu.memory_space<vmem>>, vector<32x128xbf16>
    %c0_1 = arith.constant 0 : index
    %c0_2 = arith.constant 0 : index
    %1 = vector.load %arg1[%c0_1, %c0_2] : memref<128x256xbf16, #tpu.memory_space<vmem>>, vector<128x256xbf16>
    %cst = arith.constant dense<0.000000e+00> : vector<32x256xf32>
    %2 = tpu.matmul %0, %1, %cst {dimension_numbers = #tpu.dot_dimension_numbers<[1], [0], [0], [1], [0, 0, 1, 1], [], []>} : vector<32x128xbf16>, vector<128x256xbf16>, vector<32x256xf32> -> vector<32x256xf32>
    %c0_3 = arith.constant 0 : index
    %c0_4 = arith.constant 0 : index
    %3 = vector.load %arg2[%c0_3, %c0_4] : memref<4x256xf32, #tpu.memory_space<vmem>>, vector<1x256xf32>
    %c1 = arith.constant 1 : index
    %c0_5 = arith.constant 0 : index
    %4 = vector.load %arg2[%c1, %c0_5] : memref<4x256xf32, #tpu.memory_space<vmem>>, vector<1x256xf32>
    %c2 = arith.constant 2 : index
    %c0_6 = arith.constant 0 : index
    %5 = vector.load %arg2[%c2, %c0_6] : memref<4x256xf32, #tpu.memory_space<vmem>>, vector<1x256xf32>
    %c3 = arith.constant 3 : index
    %c0_7 = arith.constant 0 : index
    %6 = vector.load %arg2[%c3, %c0_7] : memref<4x256xf32, #tpu.memory_space<vmem>>, vector<1x128xf32>
    %7 = vector.shape_cast %2 : vector<32x256xf32> to vector<4x8x256xf32>
    %cst_8 = arith.constant dense<0.000000e+00> : vector<4x256xf32>
    %8 = vector.multi_reduction <add>, %7, %cst_8 [1] : vector<4x8x256xf32> to vector<4x256xf32>
    %9 = vector.shape_cast %8 : vector<4x256xf32> to vector<4x1x256xf32>
    %cst_9 = arith.constant 8.000000e+00 : f32
    %10 = vector.broadcast %cst_9 : f32 to vector<4x1x256xf32>
    %11 = arith.divf %9, %10 : vector<4x1x256xf32>
    %12 = arith.mulf %7, %7 : vector<4x8x256xf32>
    %cst_10 = arith.constant dense<0.000000e+00> : vector<4x256xf32>
    %13 = vector.multi_reduction <add>, %12, %cst_10 [1] : vector<4x8x256xf32> to vector<4x256xf32>
    %14 = vector.shape_cast %13 : vector<4x256xf32> to vector<4x1x256xf32>
    %cst_11 = arith.constant 8.000000e+00 : f32
    %15 = vector.broadcast %cst_11 : f32 to vector<4x1x256xf32>
    %16 = arith.divf %14, %15 : vector<4x1x256xf32>
    %17 = arith.mulf %11, %11 : vector<4x1x256xf32>
    %18 = arith.subf %16, %17 : vector<4x1x256xf32>
    %cst_12 = arith.constant 0.000000e+00 : f32
    %19 = vector.broadcast %cst_12 : f32 to vector<4x1x256xf32>
    %20 = arith.maximumf %18, %19 : vector<4x1x256xf32>
    %cst_13 = arith.constant 9.99999974E-6 : f32
    %21 = vector.broadcast %cst_13 : f32 to vector<4x1x256xf32>
    %22 = arith.addf %20, %21 : vector<4x1x256xf32>
    %23 = math.rsqrt %22 : vector<4x1x256xf32>
    %24 = vector.shape_cast %3 : vector<1x256xf32> to vector<1x1x256xf32>
    %25 = vector.broadcast %24 : vector<1x1x256xf32> to vector<4x1x256xf32>
    %26 = arith.mulf %25, %23 : vector<4x1x256xf32>
    %27 = arith.mulf %11, %26 : vector<4x1x256xf32>
    %28 = vector.shape_cast %4 : vector<1x256xf32> to vector<1x1x256xf32>
    %29 = vector.broadcast %28 : vector<1x1x256xf32> to vector<4x1x256xf32>
    %30 = arith.subf %29, %27 : vector<4x1x256xf32>
    %31 = vector.broadcast %26 : vector<4x1x256xf32> to vector<4x8x256xf32>
    %32 = arith.mulf %7, %31 : vector<4x8x256xf32>
    %33 = vector.broadcast %30 : vector<4x1x256xf32> to vector<4x8x256xf32>
    %34 = arith.addf %32, %33 : vector<4x8x256xf32>
    %cst_14 = arith.constant 0.000000e+00 : f32
    %35 = vector.broadcast %cst_14 : f32 to vector<4x8x256xf32>
    %36 = arith.maximumf %34, %35 : vector<4x8x256xf32>
    %37 = vector.shape_cast %36 : vector<4x8x256xf32> to vector<32x256xf32>
    %38 = arith.truncf %37 : vector<32x256xf32> to vector<32x256xbf16>
    %c0_15 = arith.constant 0 : index
    %c0_16 = arith.constant 0 : index
    %39 = vector.load %arg3[%c0_15, %c0_16] : memref<256x256xbf16, #tpu.memory_space<vmem>>, vector<256x256xbf16>
    %cst_17 = arith.constant dense<0.000000e+00> : vector<32x256xf32>
    %40 = tpu.matmul %38, %39, %cst_17 {dimension_numbers = #tpu.dot_dimension_numbers<[1], [0], [0], [1], [0, 0, 1, 1], [], []>} : vector<32x256xbf16>, vector<256x256xbf16>, vector<32x256xf32> -> vector<32x256xf32>
    %41 = vector.broadcast %5 : vector<1x256xf32> to vector<32x256xf32>
    %42 = arith.addf %40, %41 : vector<32x256xf32>
    %cst_18 = arith.constant 0.000000e+00 : f32
    %43 = vector.broadcast %cst_18 : f32 to vector<32x256xf32>
    %44 = arith.maximumf %42, %43 : vector<32x256xf32>
    %45 = arith.truncf %44 : vector<32x256xf32> to vector<32x256xbf16>
    %c0_19 = arith.constant 0 : index
    %c0_20 = arith.constant 0 : index
    %46 = vector.load %arg4[%c0_19, %c0_20] : memref<256x128xbf16, #tpu.memory_space<vmem>>, vector<256x128xbf16>
    %cst_21 = arith.constant dense<0.000000e+00> : vector<32x128xf32>
    %47 = tpu.matmul %45, %46, %cst_21 {dimension_numbers = #tpu.dot_dimension_numbers<[1], [0], [0], [1], [0, 0, 1, 1], [], []>} : vector<32x256xbf16>, vector<256x128xbf16>, vector<32x128xf32> -> vector<32x128xf32>
    %48 = vector.broadcast %6 : vector<1x128xf32> to vector<32x128xf32>
    %49 = arith.addf %47, %48 : vector<32x128xf32>
    %50 = math.tanh %49 : vector<32x128xf32>
    %c0_22 = arith.constant 0 : index
    %c0_23 = arith.constant 0 : index
    %51 = vector.load %arg5[%c0_22, %c0_23] : memref<32x128xf32, #tpu.memory_space<vmem>>, vector<32x128xf32>
    tpu.vector_store %arg5[%c0_22, %c0_23], %50 {strides = array<i32>} : memref<32x128xf32, #tpu.memory_space<vmem>>, vector<32x128xf32>,
    return
  }
}

</mosaic_0001>

<bundles_post_ra>
// kernel: actor_forward_stacked.1
= control target key start
LH: loop header
LB: loop body
LE: loop exit
PB: predicated region body
PF: predicated region fallthrough
CT: control target
= control target key end

     0   :  { %v1364_v50 = vmov 8.0   ;;  %vm427_vm2 = vcmask 1040384   ;;  %s2053_s1 = inlined_call_operand.vmem [shape: bf16[128,256], index: 1, kind: input, shape index: {}]   ;;  %s2054_s0 = inlined_call_operand.vmem [shape: bf16[32,128], index: 0, kind: input, shape index: {}]   ;;  %s2055_s2 = inlined_call_operand.vmem [shape: f32[4,256], index: 2, kind: input, shape index: {}]   ;;  %s2056_s3 = inlined_call_operand.vmem [shape: bf16[256,256], index: 3, kind: input, shape index: {}]   ;;  %s2057_s4 = inlined_call_operand.vmem [shape: bf16[256,128], index: 4, kind: input, shape index: {}]   ;;  %s2058_s5 = inlined_call_operand.vmem [shape: f32[32,128], index: 5, kind: output, shape index: {}]  }
   0x1   :  { %v1070_v0 = vld [vmem:[%s2053_s1 + $0x70] sm:$0xf]  ;;  %v1287_v1 = vld [vmem:[%s2053_s1 + $0x74] sm:$0xf0]  ;;  %v1286_v2 = vld [vmem:[%s2053_s1 + $0x74] sm:$0xf]  ;;  %1338 = vrcp.f32 %v1364_v50 }
   0x2   :  { %v1071_v3 = vor.u32 %v1287_v1, %v1070_v0  ;;  %v1072_v4 = vld [vmem:[%s2053_s1 + $0x78] sm:$0xf0]  ;;  %v1062_v5 = vld [vmem:[%s2053_s1 + $0x60] sm:$0xf]  ;;  %v1285_v6 = vld [vmem:[%s2053_s1 + $0x64] sm:$0xf0] }
   0x3   :  { %v1075_v7 = vor.u32 %v1286_v2, %v1072_v4  ;;  %v1284_v8 = vld [vmem:[%s2053_s1 + $0x64] sm:$0xf]  ;;  %v1064_v9 = vld [vmem:[%s2053_s1 + $0x68] sm:$0xf0]  ;;  %v1063_v10 = vor.u32 %v1285_v6, %v1062_v5  ;;  %v1054_v12 = vld [vmem:[%s2053_s1 + $0x50] sm:$0xf] }
   0x4   :  { %132 = vmatpush.bf16.msra.mxu0 %v1071_v3  ;;  %v1067_v11 = vor.u32 %v1284_v8, %v1064_v9  ;;  %v1283_v13 = vld [vmem:[%s2053_s1 + $0x54] sm:$0xf0]  ;;  %v1282_v14 = vld [vmem:[%s2053_s1 + $0x54] sm:$0xf]  ;;  %v1056_v15 = vld [vmem:[%s2053_s1 + $0x58] sm:$0xf0] }
   0x5   :  { %151 = vmatpush.bf16.msra.mxu1 %v1075_v7  ;;  %v1055_v16 = vor.u32 %v1283_v13, %v1054_v12  ;;  %v1059_v17 = vor.u32 %v1282_v14, %v1056_v15  ;;  %v1046_v18 = vld [vmem:[%s2053_s1 + $0x40] sm:$0xf]  ;;  %v1281_v19 = vld [vmem:[%s2053_s1 + $0x44] sm:$0xf0]  ;;  %v1280_v20 = vld [vmem:[%s2053_s1 + $0x44] sm:$0xf] }
   0x6   :  { %v1048_v21 = vld [vmem:[%s2053_s1 + $0x48] sm:$0xf0]  ;;  %v1047_v22 = vor.u32 %v1281_v19, %v1046_v18  ;;  %v1038_v24 = vld [vmem:[%s2053_s1 + $0x30] sm:$0xf]  ;;  %v1279_v25 = vld [vmem:[%s2053_s1 + $0x34] sm:$0xf0] }
   0x7   :  { %v1051_v23 = vor.u32 %v1280_v20, %v1048_v21  ;;  %v1278_v26 = vld [vmem:[%s2053_s1 + $0x34] sm:$0xf]  ;;  %v1040_v27 = vld [vmem:[%s2053_s1 + $0x38] sm:$0xf0]  ;;  %v1039_v28 = vor.u32 %v1279_v25, %v1038_v24  ;;  %v1030_v30 = vld [vmem:[%s2053_s1 + $0x20] sm:$0xf]  ;;  %v1339_v51 = vpop.eup %1338 }
   0x8   :  { %133 = vmatpush.bf16.msra.mxu0 %v1063_v10  ;;  %v1043_v29 = vor.u32 %v1278_v26, %v1040_v27  ;;  %v1277_v31 = vld [vmem:[%s2053_s1 + $0x24] sm:$0xf0]  ;;  %v1276_v32 = vld [vmem:[%s2053_s1 + $0x24] sm:$0xf]  ;;  %v1032_v33 = vld [vmem:[%s2053_s1 + $0x28] sm:$0xf0]  ;;  %vm229_vm0 = vweird.f32 %v1339_v51 }
   0x9   :  { %152 = vmatpush.bf16.msra.mxu1 %v1067_v11  ;;  %v1031_v34 = vor.u32 %v1277_v31, %v1030_v30  ;;  %v1035_v35 = vor.u32 %v1276_v32, %v1032_v33  ;;  %v1022_v36 = vld [vmem:[%s2053_s1 + $0x10] sm:$0xf]  ;;  %v1275_v37 = vld [vmem:[%s2053_s1 + $0x14] sm:$0xf0]  ;;  %v1274_v38 = vld [vmem:[%s2053_s1 + $0x14] sm:$0xf] }
   0xa   :  { %v1024_v39 = vld [vmem:[%s2053_s1 + $0x18] sm:$0xf0]  ;;  %v1023_v40 = vor.u32 %v1275_v37, %v1022_v36  ;;  %v1014_v42 = vld [vmem:[%s2053_s1] sm:$0xf]  ;;  %v1273_v43 = vld [vmem:[%s2053_s1 + $0x4] sm:$0xf0] }
   0xb   :  { %v1027_v41 = vor.u32 %v1274_v38, %v1024_v39  ;;  %v1272_v44 = vld [vmem:[%s2053_s1 + $0x4] sm:$0xf]  ;;  %v1016_v45 = vld [vmem:[%s2053_s1 + $0x8] sm:$0xf0]  ;;  %v1015_v46 = vor.u32 %v1273_v43, %v1014_v42  ;;  %v225_v52 = vmul.f32 8.0, %v1339_v51 }
   0xc   :  { %134 = vmatpush.bf16.msra.mxu0 %v1055_v16  ;;  %v1019_v47 = vor.u32 %v1272_v44, %v1016_v45  ;;  %v1270_v48 = vld [vmem:[%s2054_s0] sm:$0xff]  ;;  %v1271_v49 = vld [vmem:[%s2054_s0 + $0x8] sm:$0xff] }
   0xd   :  { %153 = vmatpush.bf16.msra.mxu1 %v1059_v17  ;;  %v226_v53 = vsub.f32 1.0, %v225_v52 }
   0xf   :  { %v227_v58 = vmul.f32 %v1339_v51, %v226_v53 }
  0x10   :  { %135 = vmatpush.bf16.msra.mxu0 %v1047_v22 }
  0x11   :  { %154 = vmatpush.bf16.msra.mxu1 %v1051_v23  ;;  %v228_v3 = vadd.f32 %v1339_v51, %v227_v58 }
  0x13   :  { %v1516_v16 = vsel %vm229_vm0, %v1339_v51, %v228_v3 }
  0x14   :  { %136 = vmatpush.bf16.msra.mxu0 %v1039_v28 }
  0x15   :  { %155 = vmatpush.bf16.msra.mxu1 %v1043_v29 }
  0x18   :  { %137 = vmatpush.bf16.msra.mxu0 %v1031_v34 }
  0x19   :  { %156 = vmatpush.bf16.msra.mxu1 %v1035_v35 }
  0x1c   :  { %138 = vmatpush.bf16.msra.mxu0 %v1023_v40 }
  0x1d   :  { %157 = vmatpush.bf16.msra.mxu1 %v1027_v41 }
  0x20   :  { %139 = vmatpush.bf16.msra.mxu0 %v1015_v46 }
  0x21   :  { %158 = vmatpush.bf16.msra.mxu1 %v1019_v47 }
  0x23   :  { %140 = vmatmul.bf16.vlgmr.msra.gmra.mxu0 %v1270_v48 }
  0x24   :  { %159 = vmatmul.bf16.vlgmr.msra.gmra.mxu1 %v1270_v48 }
  0x33   :  { %145 = vmatmul.bf16.gmra.mxu0 %v1271_v49 }
  0x34   :  { %164 = vmatmul.bf16.gmra.mxu1 %v1271_v49 }
  0xa0   :  { %v1497_v54 = vpop.f32.mrf.mxu0 }
  0xa1   :  { %v176_v55 = vrot.slane %v1497_v54, 4  ;;  %v239_v56 = vmul.f32 %v1497_v54, %v1497_v54  ;;  %v1502_v57 = vpop.f32.mrf.mxu1 }
  0xa2   :  { %v182_v59 = vrot.slane %v1502_v57, 4  ;;  %v240_v60 = vmul.f32 %v1502_v57, %v1502_v57 }
  0xa3   :  { %v177_v61 = vadd.f32 %v176_v55, %v1497_v54  ;;  %v247_v62 = vrot.slane %v239_v56, 4 }
  0xa4   :  { %v183_v63 = vadd.f32 %v182_v59, %v1502_v57  ;;  %v253_v0 = vrot.slane %v240_v60, 4 }
  0xa5   :  { %v178_v1 = vrot.slane %v177_v61, 2  ;;  %v248_v2 = vadd.f32 %v247_v62, %v239_v56 }
  0xa6   :  { %v184_v4 = vrot.slane %v183_v63, 2  ;;  %v254_v5 = vadd.f32 %v253_v0, %v240_v60 }
  0xa7   :  { %v179_v6 = vadd.f32 %v178_v1, %v177_v61  ;;  %v249_v7 = vrot.slane %v248_v2, 2 }
  0xa8   :  { %v185_v8 = vadd.f32 %v184_v4, %v183_v63  ;;  %v255_v9 = vrot.slane %v254_v5, 2  ;;  %v1509_v10 = vpop.f32.mrf.mxu0 }
  0xa9   :  { %v180_v11 = vrot.slane %v179_v6, 1  ;;  %v250_v12 = vadd.f32 %v249_v7, %v248_v2  ;;  %v188_v13 = vrot.slane %v1509_v10, 4  ;;  %v241_v14 = vmul.f32 %v1509_v10, %v1509_v10  ;;  %v1514_v15 = vpop.f32.mrf.mxu1 }
  0xaa   :  { %v186_v17 = vrot.slane %v185_v8, 1  ;;  %v256_v18 = vadd.f32 %v255_v9, %v254_v5  ;;  %v194_v19 = vrot.slane %v1514_v15, 4  ;;  %v242_v27 = vmul.f32 %v1514_v15, %v1514_v15 }
  0xab   :  { %v181_v20 = vadd.f32 %v180_v11, %v179_v6  ;;  %v251_v21 = vrot.slane %v250_v12, 1  ;;  %v189_v22 = vadd.f32 %v188_v13, %v1509_v10  ;;  %v259_v23 = vrot.slane %v241_v14, 4 }
  0xac   :  { %v187_v24 = vadd.f32 %v186_v17, %v185_v8  ;;  %v257_v25 = vrot.slane %v256_v18, 1  ;;  %v195_v26 = vadd.f32 %v194_v19, %v1514_v15  ;;  %v265_v35 = vrot.slane %v242_v27, 4 }
  0xad   :  { %v1524_v28 = vmul.f32 %v1516_v16, %v181_v20  ;;  %v252_v29 = vadd.f32 %v251_v21, %v250_v12  ;;  %v190_v30 = vrot.slane %v189_v22, 2  ;;  %v260_v31 = vadd.f32 %v259_v23, %v241_v14 }
  0xae   :  { %v1527_v32 = vmul.f32 %v1516_v16, %v187_v24  ;;  %v258_v33 = vadd.f32 %v257_v25, %v256_v18  ;;  %v196_v34 = vrot.slane %v195_v26, 2  ;;  %v266_v43 = vadd.f32 %v265_v35, %v242_v27 }
  0xaf   :  { %v295_v36 = vmul.f32 %v252_v29, %v1516_v16  ;;  %v303_v37 = vmul.f32 %v1524_v28, %v1524_v28  ;;  %v191_v38 = vadd.f32 %v190_v30, %v189_v22  ;;  %v261_v39 = vrot.slane %v260_v31, 2 }
  0xb0   :  { %v296_v40 = vmul.f32 %v258_v33, %v1516_v16  ;;  %v304_v41 = vmul.f32 %v1527_v32, %v1527_v32  ;;  %v197_v42 = vadd.f32 %v196_v34, %v195_v26  ;;  %v1535_v44 = vpop.f32.mrf.mxu0  ;;  %v267_v51 = vrot.slane %v266_v43, 2 }
  0xb1   :  { %v311_v45 = vsub.f32 %v295_v36, %v303_v37  ;;  %v192_v46 = vrot.slane %v191_v38, 1  ;;  %v262_v47 = vadd.f32 %v261_v39, %v260_v31  ;;  %v200_v48 = vrot.slane %v1535_v44, 4  ;;  %v1551_v7 = vpop.f32.mrf.mxu1 }
  0xb2   :  { %v312_v49 = vsub.f32 %v296_v40, %v304_v41  ;;  %v198_v50 = vrot.slane %v197_v42, 1  ;;  %v243_v52 = vmul.f32 %v1535_v44, %v1535_v44  ;;  %v268_v61 = vadd.f32 %v267_v51, %v266_v43 }
  0xb3   :  { %v319_v53 = vmax.f32 %v311_v45, 0.0  ;;  %v193_v55 = vadd.f32 %v192_v46, %v191_v38  ;;  %v263_v56 = vrot.slane %v262_v47, 1  ;;  %v201_v58 = vadd.f32 %v200_v48, %v1535_v44 }
  0xb4   :  { %v320_v59 = vmax.f32 %v312_v49, 0.0  ;;  %v199_v60 = vadd.f32 %v198_v50, %v197_v42  ;;  %v271_v62 = vrot.slane %v243_v52, 4  ;;  %v269_v5 = vrot.slane %v268_v61, 1 }
  0xb5   :  { %v1541_v63 = vadd.f32 1e-05, %v319_v53  ;;  %v1544_v0 = vmul.f32 %v1516_v16, %v193_v55  ;;  %v264_v1 = vadd.f32 %v263_v56, %v262_v47  ;;  %v202_v2 = vrot.slane %v201_v58, 2 }
  0xb6   :  { %v1546_v3 = vadd.f32 1e-05, %v320_v59  ;;  %v1549_v4 = vmul.f32 %v1516_v16, %v199_v60  ;;  %v272_v6 = vadd.f32 %v271_v62, %v243_v52  ;;  %v270_v11 = vadd.f32 %v269_v5, %v268_v61 }
  0xb7   :  { %1340 = vrsqrt.f32 %v1541_v63  ;;  %v297_v8 = vmul.f32 %v264_v1, %v1516_v16  ;;  %v305_v9 = vmul.f32 %v1544_v0, %v1544_v0  ;;  %v203_v17 = vadd.f32 %v202_v2, %v201_v58 }
  0xb8   :  { %1342 = vrsqrt.f32 %v1546_v3  ;;  %v306_v12 = vmul.f32 %v1549_v4, %v1549_v4  ;;  %v1560_v13 = vpop.f32.mrf.mxu0  ;;  %v273_v18 = vrot.slane %v272_v6, 2  ;;  %v206_v19 = vrot.slane %v1551_v7, 4 }
  0xb9   :  { %v313_v14 = vsub.f32 %v297_v8, %v305_v9  ;;  %v298_v20 = vmul.f32 %v270_v11, %v1516_v16  ;;  %v244_v21 = vmul.f32 %v1551_v7, %v1551_v7  ;;  %v212_v22 = vrot.slane %v1560_v13, 4 }
  0xba   :  { %v245_v23 = vmul.f32 %v1560_v13, %v1560_v13  ;;  %v204_v25 = vrot.slane %v203_v17, 1  ;;  %v274_v26 = vadd.f32 %v273_v18, %v272_v6  ;;  %v207_v27 = vadd.f32 %v206_v19, %v1551_v7 }
  0xbb   :  { %v321_v24 = vmax.f32 %v313_v14, 0.0  ;;  %v314_v29 = vsub.f32 %v298_v20, %v306_v12  ;;  %v277_v30 = vrot.slane %v244_v21, 4  ;;  %v213_v31 = vadd.f32 %v212_v22, %v1560_v13  ;;  %v1597_v12 = vpop.f32.mrf.mxu1 }
  0xbc   :  { %v205_v35 = vadd.f32 %v204_v25, %v203_v17  ;;  %v275_v36 = vrot.slane %v274_v26, 1  ;;  %v208_v37 = vrot.slane %v207_v27, 2  ;;  %v283_v43 = vrot.slane %v245_v23, 4 }
  0xbd   :  { %v1571_v33 = vpop.eup %1340  ;;  %v1573_v34 = vadd.f32 1e-05, %v321_v24  ;;  %v322_v40 = vmax.f32 %v314_v29, 0.0  ;;  %v278_v41 = vadd.f32 %v277_v30, %v244_v21  ;;  %v214_v52 = vrot.slane %v213_v31, 2 }
  0xbe   :  { %v1575_v38 = vpop.eup %1342  ;;  %v336_v39 = vmul.f32 %v1571_v33, %v1541_v63  ;;  %v1586_v47 = vmul.f32 %v1516_v16, %v205_v35  ;;  %v276_v48 = vadd.f32 %v275_v36, %v274_v26  ;;  %v209_v50 = vadd.f32 %v208_v37, %v207_v27 }
  0xbf   :  { %v346_v42 = vmul.f32 %v1575_v38, %v1546_v3  ;;  %1344 = vrsqrt.f32 %v1573_v34  ;;  %v1583_v46 = vadd.f32 1e-05, %v322_v40  ;;  %v279_v51 = vrot.slane %v278_v41, 2 }
  0xc0   :  { %v337_v45 = vmul.f32 %v1571_v33, %v336_v39  ;;  %v299_v53 = vmul.f32 %v276_v48, %v1516_v16  ;;  %v307_v56 = vmul.f32 %v1586_v47, %v1586_v47  ;;  %v210_v58 = vrot.slane %v209_v50, 1 }
  0xc1   :  { %v347_v49 = vmul.f32 %v1575_v38, %v346_v42  ;;  %1346 = vrsqrt.f32 %v1583_v46  ;;  %v280_v59 = vadd.f32 %v279_v51, %v278_v41  ;;  %v215_v61 = vadd.f32 %v214_v52, %v213_v31  ;;  %v1136_v41 = vld [vmem:[%s2056_s3 + $0x70] sm:$0xf]  ;;  %v1303_v42 = vld [vmem:[%s2056_s3 + $0x74] sm:$0xf0] }
  0xc2   :  { %v338_v60 = vmul.f32 0.5, %v337_v45  ;;  %v284_v62 = vadd.f32 %v283_v43, %v245_v23  ;;  %v315_v5 = vsub.f32 %v299_v53, %v307_v56  ;;  %v211_v6 = vadd.f32 %v210_v58, %v209_v50  ;;  %v1200_v58 = vld [vmem:[%s2056_s3 + $0xf0] sm:$0xf] }
  0xc3   :  { %v348_v55 = vmul.f32 0.5, %v347_v49  ;;  %v281_v8 = vrot.slane %v280_v59, 1  ;;  %v216_v11 = vrot.slane %v215_v61, 1  ;;  %vm352_vm1 = vweird.f32 %v1575_v38 }
  0xc4   :  { %v323_v14 = vmax.f32 %v315_v5, 0.0  ;;  %v1601_v17 = vmul.f32 %v1516_v16, %v211_v6  ;;  %v339_v20 = vsub.f32 1.5, %v338_v60  ;;  %v285_v23 = vrot.slane %v284_v62, 2  ;;  %v1302_v5 = vld [vmem:[%s2056_s3 + $0x74] sm:$0xf] }
  0xc5   :  { %v1593_v1 = vpop.eup %1344  ;;  %v349_v2 = vsub.f32 1.5, %v348_v55  ;;  %v282_v18 = vadd.f32 %v281_v8, %v280_v59  ;;  %v217_v26 = vadd.f32 %v216_v11, %v215_v61  ;;  %v218_v27 = vrot.slane %v1597_v12, 4  ;;  %v1319_v59 = vld [vmem:[%s2056_s3 + $0xf4] sm:$0xf0]  ;;  %v1138_v11 = vld [vmem:[%s2056_s3 + $0x78] sm:$0xf0] }
  0xc6   :  { %v356_v9 = vmul.f32 %v1593_v1, %v1573_v34  ;;  %v1609_v25 = vadd.f32 1e-05, %v323_v14  ;;  %vm351_vm3 = vweird.f32 %v1546_v3  ;;  %v308_v31 = vmul.f32 %v1601_v17, %v1601_v17  ;;  %v1318_v14 = vld [vmem:[%s2056_s3 + $0xf4] sm:$0xf] }
  0xc7   :  { %v1603_v19 = vpop.eup %1346  ;;  %v350_v21 = vmul.f32 %v1575_v38, %v349_v2  ;;  %v300_v30 = vmul.f32 %v282_v18, %v1516_v16  ;;  %vm341_vm4 = vweird.f32 %v1541_v63  ;;  %vm342_vm5 = vweird.f32 %v1571_v33  ;;  %vm1620_vm6 = vmor %vm351_vm3, %vm352_vm1  ;;  %v1202_v18 = vld [vmem:[%s2056_s3 + $0xf8] sm:$0xf0] }
  0xc8   :  { %v357_v22 = vmul.f32 %v1593_v1, %v356_v9  ;;  %v366_v24 = vmul.f32 %v1603_v19, %v1583_v46  ;;  %1348 = vrsqrt.f32 %v1609_v25  ;;  %v340_v3 = vmul.f32 %v1571_v33, %v339_v20  ;;  %vm1654_vm9 = vmor %vm341_vm4, %vm342_vm5  ;;  %v1682_v20 = vld [vmem:[%s2055_s2] ss:$4 sm:$0x3] }
  0xc9   :  { %v354_v37 = vsel %vm1620_vm6, %v1575_v38, %v350_v21  ;;  %vm361_vm7 = vweird.f32 %v1573_v34  ;;  %v316_v39 = vsub.f32 %v300_v30, %v308_v31  ;;  %v286_v40 = vadd.f32 %v285_v23, %v284_v62  ;;  %v1192_v30 = vld [vmem:[%s2056_s3 + $0xe0] sm:$0xf]  ;;  %v1317_v31 = vld [vmem:[%s2056_s3 + $0xe4] sm:$0xf0]  ;;  %v1120_v34 = vld [vmem:[%s2056_s3 + $0x50] sm:$0xf] }
  0xca   :  { %v358_v29 = vmul.f32 0.5, %v357_v22  ;;  %v367_v36 = vmul.f32 %v1603_v19, %v366_v24  ;;  %vm372_vm8 = vweird.f32 %v1603_v19  ;;  %v1639_v45 = vmul.f32 %v1516_v16, %v217_v26  ;;  %v1128_v24 = vld [vmem:[%s2056_s3 + $0x60] sm:$0xf] }
  0xcb   :  { %v219_v38 = vadd.f32 %v218_v27, %v1597_v12  ;;  %v324_v49 = vmax.f32 %v316_v39, 0.0  ;;  %v287_v50 = vrot.slane %v286_v40, 1  ;;  %v246_v51 = vmul.f32 %v1597_v12, %v1597_v12  ;;  %v1130_v39 = vld [vmem:[%s2056_s3 + $0x68] sm:$0xf0] }
  0xcc   :  { %v368_v43 = vmul.f32 0.5, %v367_v36  ;;  %v359_v48 = vsub.f32 1.5, %v358_v29  ;;  %v423_v52 = vrot.slane %v354_v37, 7  ;;  %v1137_v56 = vor.u32 %v1303_v42, %v1136_v41 }
  0xcd   :  { %v220_v55 = vrot.slane %v219_v38, 2  ;;  %vm371_vm10 = vweird.f32 %v1583_v46  ;;  %v1659_v61 = vadd.f32 1e-05, %v324_v49  ;;  %v288_v62 = vadd.f32 %v287_v50, %v286_v40 }
  0xce   :  { %v369_v53 = vsub.f32 1.5, %v368_v43  ;;  %v289_v2 = vrot.slane %v246_v51, 4  ;;  %v1664_v6 = vpop.eup %1348  ;;  %vm362_vm11 = vweird.f32 %v1593_v1  ;;  %v309_v8 = vmul.f32 %v1639_v45, %v1639_v45  ;;  %737 = vmatpush.bf16.msra.mxu2 %v1137_v56  ;;  %vm373_vm12 = vmor %vm371_vm10, %vm372_vm8 }
  0xcf   :  { %v221_v9 = vadd.f32 %v220_v55, %v219_v38  ;;  %v344_v21 = vsel %vm1654_vm9, %v1571_v33, %v340_v3  ;;  %v360_v22 = vmul.f32 %v1593_v1, %v359_v48  ;;  %v376_v23 = vmul.f32 %v1664_v6, %v1609_v25  ;;  %v1301_v33 = vld [vmem:[%s2056_s3 + $0x64] sm:$0xf0]  ;;  %vm363_vm13 = vmor %vm361_vm7, %vm362_vm11  ;;  %v1316_v38 = vld [vmem:[%s2056_s3 + $0xe4] sm:$0xf] }
  0xd0   :  { %v370_v63 = vmul.f32 %v1603_v19, %v369_v53  ;;  %1350 = vrsqrt.f32 %v1659_v61  ;;  %v428_v26 = vsel %vm427_vm2, %v344_v21, %v423_v52  ;;  %v301_v46 = vmul.f32 %v288_v62, %v1516_v16  ;;  %v1194_v48 = vld [vmem:[%s2056_s3 + $0xe8] sm:$0xf0]  ;;  %v1299_v52 = vld [vmem:[%s2056_s3 + $0x54] sm:$0xf0] }
  0xd1   :  { %v222_v29 = vrot.slane %v221_v9, 1  ;;  %v377_v36 = vmul.f32 %v1664_v6, %v376_v23  ;;  %v290_v3 = vadd.f32 %v289_v2, %v246_v51  ;;  %v1201_v37 = vor.u32 %v1319_v59, %v1200_v58  ;;  %v1184_v58 = vld [vmem:[%s2056_s3 + $0xd0] sm:$0xf]  ;;  %v1315_v59 = vld [vmem:[%s2056_s3 + $0xd4] sm:$0xf0] }
  0xd2   :  { %v374_v27 = vsel %vm373_vm12, %v1603_v19, %v370_v63  ;;  %v1300_v19 = vld [vmem:[%s2056_s3 + $0x64] sm:$0xf]  ;;  %v317_v40 = vsub.f32 %v301_v46, %v309_v8  ;;  %v1141_v42 = vor.u32 %v1302_v5, %v1138_v11  ;;  %v1205_v43 = vor.u32 %v1318_v14, %v1202_v18  ;;  %v1298_v8 = vld [vmem:[%s2056_s3 + $0x54] sm:$0xf]  ;;  %v1186_v14 = vld [vmem:[%s2056_s3 + $0xd8] sm:$0xf0] }
  0xd3   :  { %v424_v35 = vrot.slane %v374_v27, 7  ;;  %v223_v41 = vadd.f32 %v222_v29, %v221_v9  ;;  %v364_v49 = vsel %vm363_vm13, %v1593_v1, %v360_v22  ;;  %v291_v50 = vrot.slane %v290_v3, 2  ;;  %756 = vmatpush.bf16.msra.mxu3 %v1201_v37  ;;  %v1122_v9 = vld [vmem:[%s2056_s3 + $0x58] sm:$0xf0]  ;;  %v1314_v11 = vld [vmem:[%s2056_s3 + $0xd4] sm:$0xf] }
  0xd4   :  { %v1129_v51 = vor.u32 %v1301_v33, %v1128_v24  ;;  %v1735_v53 = vmul.f32 %v428_v26, %v1682_v20  ;;  %v325_v56 = vmax.f32 %v317_v40, 0.0  ;;  %775 = vmatpush.bf16.msrb.mxu0 %v1141_v42  ;;  %794 = vmatpush.bf16.msrb.mxu1 %v1205_v43  ;;  %v1193_v1 = vor.u32 %v1317_v31, %v1192_v30  ;;  %v1112_v23 = vld [vmem:[%s2056_s3 + $0x40] sm:$0xf]  ;;  %v1297_v27 = vld [vmem:[%s2056_s3 + $0x44] sm:$0xf0] }
  0xd5   :  { %v429_v55 = vsel %vm427_vm2, %v364_v49, %v424_v35  ;;  %v1747_v62 = vmul.f32 %v1516_v16, %v223_v41  ;;  %v292_v2 = vadd.f32 %v291_v50, %v290_v3  ;;  %v1133_v5 = vor.u32 %v1300_v19, %v1130_v39  ;;  %v1176_v46 = vld [vmem:[%s2056_s3 + $0xc0] sm:$0xf]  ;;  %v1313_v31 = vld [vmem:[%s2056_s3 + $0xc4] sm:$0xf0]  ;;  %v1296_v35 = vld [vmem:[%s2056_s3 + $0x44] sm:$0xf] }
  0xd6   :  { %v1744_v60 = vpop.eup %1350  ;;  %738 = vmatpush.bf16.msra.mxu2 %v1129_v51  ;;  %v1197_v63 = vor.u32 %v1316_v38, %v1194_v48  ;;  %v378_v18 = vmul.f32 0.5, %v377_v36  ;;  %v1763_v22 = vadd.f32 1e-05, %v325_v56  ;;  %v1769_v24 = vmul.f32 %v429_v55, %v1682_v20  ;;  %v1114_v19 = vld [vmem:[%s2056_s3 + $0x48] sm:$0xf0] }
  0xd7   :  { %v386_v21 = vmul.f32 %v1744_v60, %v1659_v61  ;;  %v293_v33 = vrot.slane %v292_v2, 1  ;;  %757 = vmatpush.bf16.msra.mxu3 %v1193_v1  ;;  %v1121_v26 = vor.u32 %v1299_v52, %v1120_v34  ;;  %v445_v29 = vperm.slane %v1735_v53, 1  ;;  %v1312_v39 = vld [vmem:[%s2056_s3 + $0xc4] sm:$0xf]  ;;  %v1178_v40 = vld [vmem:[%s2056_s3 + $0xc8] sm:$0xf0] }
  0xd8   :  { %776 = vmatpush.bf16.msrb.mxu0 %v1133_v5  ;;  %795 = vmatpush.bf16.msrb.mxu1 %v1197_v63  ;;  %1352 = vrsqrt.f32 %v1763_v22  ;;  %v310_v3 = vmul.f32 %v1747_v62, %v1747_v62  ;;  %v1185_v37 = vor.u32 %v1315_v59, %v1184_v58  ;;  %v379_v41 = vsub.f32 1.5, %v378_v18  ;;  %v1104_v48 = vld [vmem:[%s2056_s3 + $0x30] sm:$0xf]  ;;  %v1295_v49 = vld [vmem:[%s2056_s3 + $0x34] sm:$0xf0] }
  0xd9   :  { %v387_v30 = vmul.f32 %v1744_v60, %v386_v21  ;;  %v294_v36 = vadd.f32 %v293_v33, %v292_v2  ;;  %v1125_v43 = vor.u32 %v1298_v8, %v1122_v9  ;;  %v1189_v38 = vor.u32 %v1314_v11, %v1186_v14  ;;  %v1168_v55 = vld [vmem:[%s2056_s3 + $0xb0] sm:$0xf]  ;;  %v1311_v56 = vld [vmem:[%s2056_s3 + $0xb4] sm:$0xf0]  ;;  %v1106_v2 = vld [vmem:[%s2056_s3 + $0x38] sm:$0xf0] }
  0xda   :  { %739 = vmatpush.bf16.msra.mxu2 %v1121_v26  ;;  %v447_v50 = vperm.slane %v1769_v24, 1  ;;  %v1113_v34 = vor.u32 %v1297_v27, %v1112_v23  ;;  %v1177_v52 = vor.u32 %v1313_v31, %v1176_v46  ;;  %vm392_vm14 = vweird.f32 %v1744_v60  ;;  %v1310_v9 = vld [vmem:[%s2056_s3 + $0xb4] sm:$0xf]  ;;  %v1170_v11 = vld [vmem:[%s2056_s3 + $0xb8] sm:$0xf0] }
  0xdb   :  { %v388_v42 = vmul.f32 0.5, %v387_v30  ;;  %v302_v51 = vmul.f32 %v294_v36, %v1516_v16  ;;  %758 = vmatpush.bf16.msra.mxu3 %v1185_v37  ;;  %v1117_v58 = vor.u32 %v1296_v35, %v1114_v19  ;;  %v1181_v59 = vor.u32 %v1312_v39, %v1178_v40  ;;  %v1294_v16 = vld [vmem:[%s2056_s3 + $0x34] sm:$0xf]  ;;  %v1096_v14 = vld [vmem:[%s2056_s3 + $0x20] sm:$0xf] }
  0xdc   :  { %777 = vmatpush.bf16.msrb.mxu0 %v1125_v43  ;;  %796 = vmatpush.bf16.msrb.mxu1 %v1189_v38  ;;  %v1821_v5 = vmul.f32 %v445_v29, %v1527_v32  ;;  %v1105_v8 = vor.u32 %v1295_v49, %v1104_v48  ;;  %v380_v18 = vmul.f32 %v1664_v6, %v379_v41  ;;  %vm382_vm15 = vweird.f32 %v1664_v6  ;;  %v1293_v21 = vld [vmem:[%s2056_s3 + $0x24] sm:$0xf0]  ;;  %v1160_v23 = vld [vmem:[%s2056_s3 + $0xa0] sm:$0xf]  ;;  %v1292_v31 = vld [vmem:[%s2056_s3 + $0x24] sm:$0xf] }
  0xdd   :  { %v389_v1 = vsub.f32 1.5, %v388_v42  ;;  %v318_v63 = vsub.f32 %v302_v51, %v310_v3  ;;  %vm391_vm0 = vweird.f32 %v1659_v61  ;;  %v1309_v33 = vld [vmem:[%s2056_s3 + $0xa4] sm:$0xf0]  ;;  %v1850_v27 = vmul.f32 %v447_v50, %v1549_v4  ;;  %v1098_v4 = vld [vmem:[%s2056_s3 + $0x28] sm:$0xf0] }
  0xde   :  { %740 = vmatpush.bf16.msra.mxu2 %v1113_v34  ;;  %v1845_v26 = vpop.eup %1352  ;;  %vm381_vm1 = vweird.f32 %v1609_v25  ;;  %vm1855_vm3 = vmor %vm391_vm0, %vm392_vm14  ;;  %v1169_v30 = vor.u32 %v1311_v56, %v1168_v55  ;;  %v1308_v35 = vld [vmem:[%s2056_s3 + $0xa4] sm:$0xf]  ;;  %v1109_v3 = vor.u32 %v1294_v16, %v1106_v2  ;;  %v1173_v37 = vor.u32 %v1310_v9, %v1170_v11  ;;  %v1162_v19 = vld [vmem:[%s2056_s3 + $0xa8] sm:$0xf0] }
  0xdf   :  { %v390_v32 = vmul.f32 %v1744_v60, %v389_v1  ;;  %v326_v46 = vmax.f32 %v318_v63, 0.0  ;;  %759 = vmatpush.bf16.msra.mxu3 %v1177_v52  ;;  %v1088_v39 = vld [vmem:[%s2056_s3 + $0x10] sm:$0xf]  ;;  %v444_v40 = vperm.slane %v1735_v53, 0  ;;  %v476_v41 = vrot.slane %v1821_v5, 7  ;;  %vm383_vm4 = vmor %vm381_vm1, %vm382_vm15 }
  0xe0   :  { %778 = vmatpush.bf16.msrb.mxu0 %v1117_v58  ;;  %797 = vmatpush.bf16.msrb.mxu1 %v1181_v59  ;;  %v1097_v43 = vor.u32 %v1293_v21, %v1096_v14  ;;  %v1291_v38 = vld [vmem:[%s2056_s3 + $0x14] sm:$0xf0]  ;;  %v384_v48 = vsel %vm383_vm4, %v1664_v6, %v380_v18  ;;  %v396_v49 = vmul.f32 %v1845_v26, %v1763_v22  ;;  %v1152_v51 = vld [vmem:[%s2056_s3 + $0x90] sm:$0xf]  ;;  %v1290_v34 = vld [vmem:[%s2056_s3 + $0x14] sm:$0xf]  ;;  %vm402_vm6 = vweird.f32 %v1845_v26 }
  0xe1   :  { %v394_v36 = vsel %vm1855_vm3, %v1744_v60, %v390_v32  ;;  %v1883_v42 = vadd.f32 1e-05, %v326_v46  ;;  %v1307_v25 = vld [vmem:[%s2056_s3 + $0x94] sm:$0xf0]  ;;  %v1090_v52 = vld [vmem:[%s2056_s3 + $0x18] sm:$0xf0]  ;;  %v1161_v56 = vor.u32 %v1309_v33, %v1160_v23  ;;  %v1101_v59 = vor.u32 %v1292_v31, %v1098_v4 }
  0xe2   :  { %v425_v60 = vrot.slane %v394_v36, 7  ;;  %741 = vmatpush.bf16.msra.mxu2 %v1105_v8  ;;  %v477_v6 = vrot.slane %v1850_v27, 7  ;;  %v1306_v1 = vld [vmem:[%s2056_s3 + $0x94] sm:$0xf]  ;;  %v1154_v58 = vld [vmem:[%s2056_s3 + $0x98] sm:$0xf0]  ;;  %v1165_v16 = vor.u32 %v1308_v35, %v1162_v19  ;;  %v460_v8 = vmul.f32 %v444_v40, %v1524_v28 }
  0xe3   :  { %1354 = vrsqrt.f32 %v1883_v42  ;;  %760 = vmatpush.bf16.msra.mxu3 %v1169_v30  ;;  %v1080_v2 = vld [vmem:[%s2056_s3] sm:$0xf]  ;;  %v446_v63 = vperm.slane %v1769_v24, 0  ;;  %v493_v9 = vmul.f32 %v445_v29, %v1502_v57  ;;  %v495_v11 = vmul.f32 %v447_v50, %v1514_v15  ;;  %v1289_v18 = vld [vmem:[%s2056_s3 + $0x4] sm:$0xf0] }
  0xe4   :  { %v430_v55 = vsel %vm427_vm2, %v384_v48, %v425_v60  ;;  %779 = vmatpush.bf16.msrb.mxu0 %v1109_v3  ;;  %798 = vmatpush.bf16.msrb.mxu1 %v1173_v37  ;;  %v1918_v5 = vld [vmem:[%s2055_s2 + $0x1] ss:$4 sm:$0x3]  ;;  %v1089_v14 = vor.u32 %v1291_v38, %v1088_v39  ;;  %v1305_v28 = vld [vmem:[%s2056_s3 + $0x84] sm:$0xf0]  ;;  %v397_v53 = vmul.f32 %v1845_v26, %v396_v49  ;;  %vm411_vm7 = vweird.f32 %v1883_v42 }
  0xe5   :  { %v1144_v32 = vld [vmem:[%s2056_s3 + $0x80] sm:$0xf]  ;;  %v1938_v57 = vmul.f32 %v430_v55, %v1682_v20  ;;  %v462_v15 = vmul.f32 %v446_v63, %v1544_v0  ;;  %v480_v24 = vsel %vm427_vm2, %v460_v8, %v476_v41  ;;  %v1153_v29 = vor.u32 %v1307_v25, %v1152_v51  ;;  %v1288_v61 = vld [vmem:[%s2056_s3 + $0x4] sm:$0xf]  ;;  %v1082_v0 = vld [vmem:[%s2056_s3 + $0x8] sm:$0xf0] }
  0xe6   :  { %742 = vmatpush.bf16.msra.mxu2 %v1097_v43  ;;  %v1093_v50 = vor.u32 %v1290_v34, %v1090_v52  ;;  %v1157_v21 = vor.u32 %v1306_v1, %v1154_v58  ;;  %v488_v23 = vsub.f32 %v1918_v5, %v480_v24  ;;  %v1081_v33 = vor.u32 %v1289_v18, %v1080_v2  ;;  %v1304_v31 = vld [vmem:[%s2056_s3 + $0x84] sm:$0xf]  ;;  %v1146_v4 = vld [vmem:[%s2056_s3 + $0x88] sm:$0xf0]  ;;  %v1326_v1 = vld [vmem:[%s2057_s4 + $0x30] sm:$0xff] }
  0xe7   :  { %761 = vmatpush.bf16.msra.mxu3 %v1161_v56  ;;  %v1145_v27 = vor.u32 %v1305_v28, %v1144_v32  ;;  %v481_v46 = vsel %vm427_vm2, %v462_v15, %v477_v6  ;;  %v492_v36 = vmul.f32 %v444_v40, %v1497_v54  ;;  %v449_v19 = vperm.slane %v1938_v57, 1  ;;  %v1327_v54 = vld [vmem:[%s2057_s4 + $0x38] sm:$0xff]  ;;  %v1325_v32 = vld [vmem:[%s2057_s4 + $0x28] sm:$0xff] }
  0xe8   :  { %780 = vmatpush.bf16.msrb.mxu0 %v1101_v59  ;;  %799 = vmatpush.bf16.msrb.mxu1 %v1165_v16  ;;  %v489_v35 = vsub.f32 %v1918_v5, %v481_v46  ;;  %v504_v3 = vperm.slane %v488_v23, 0  ;;  %v505_v37 = vperm.slane %v488_v23, 1  ;;  %v398_v39 = vmul.f32 0.5, %v397_v53  ;;  %v1332_v23 = vld [vmem:[%s2057_s4 + $0x60] sm:$0xff] }
  0xe9   :  { %v1355_v30 = vpop.eup %1354  ;;  %v494_v60 = vmul.f32 %v446_v63, %v1509_v10  ;;  %v1085_v25 = vor.u32 %v1288_v61, %v1082_v0  ;;  %v1149_v34 = vor.u32 %v1304_v31, %v1146_v4  ;;  %v1335_v10 = vld [vmem:[%s2057_s4 + $0x78] sm:$0xff]  ;;  %v465_v6 = vmul.f32 %v449_v19, %v1601_v17 }
  0xea   :  { %743 = vmatpush.bf16.msra.mxu2 %v1089_v14  ;;  %v406_v41 = vmul.f32 %v1355_v30, %v1883_v42  ;;  %v506_v43 = vperm.slane %v489_v35, 0  ;;  %v520_v38 = vadd.f32 %v504_v3, %v492_v36  ;;  %v507_v48 = vperm.slane %v489_v35, 1  ;;  %v1333_v42 = vld [vmem:[%s2057_s4 + $0x68] sm:$0xff] }
  0xeb   :  { %762 = vmatpush.bf16.msra.mxu3 %v1153_v29  ;;  %v521_v49 = vadd.f32 %v505_v37, %v493_v9  ;;  %v399_v55 = vsub.f32 1.5, %v398_v39  ;;  %vm412_vm5 = vweird.f32 %v1355_v30  ;;  %v448_v17 = vperm.slane %v1938_v57, 0 }
  0xec   :  { %v407_v51 = vmul.f32 %v1355_v30, %v406_v41  ;;  %781 = vmatpush.bf16.msrb.mxu0 %v1093_v50  ;;  %800 = vmatpush.bf16.msrb.mxu1 %v1157_v21  ;;  %v522_v40 = vadd.f32 %v506_v43, %v494_v60  ;;  %v523_v52 = vadd.f32 %v507_v48, %v495_v11  ;;  %v528_v58 = vmax.f32 %v520_v38, 0.0  ;;  %v1334_v11 = vld [vmem:[%s2057_s4 + $0x70] sm:$0xff]  ;;  %vm413_vm8 = vmor %vm411_vm7, %vm412_vm5 }
  0xed   :  { %v529_v16 = vmax.f32 %v521_v49, 0.0  ;;  %v400_v14 = vmul.f32 %v1845_v26, %v399_v55  ;;  %v478_v28 = vrot.slane %v465_v6, 7  ;;  %vm401_vm9 = vweird.f32 %v1763_v22  ;;  %v1329_v49 = vld [vmem:[%s2057_s4 + $0x48] sm:$0xff] }
  0xee   :  { %744 = vmatpush.bf16.msra.mxu2 %v1081_v33  ;;  %v408_v56 = vmul.f32 0.5, %v407_v51  ;;  %v530_v59 = vmax.f32 %v522_v40, 0.0  ;;  %v531_v2 = vmax.f32 %v523_v52, 0.0  ;;  %vm403_vm10 = vmor %vm401_vm9, %vm402_vm6  ;;  %v464_v24 = vmul.f32 %v448_v17, %v1586_v47  ;;  %v1322_v51 = vld [vmem:[%s2057_s4 + $0x10] sm:$0xff] }
  0xef   :  { %763 = vmatpush.bf16.msra.mxu3 %v1145_v27  ;;  %v404_v29 = vsel %vm403_vm10, %v1845_v26, %v400_v14  ;;  %v496_v4 = vmul.f32 %v448_v17, %v1535_v44  ;;  %v1331_v44 = vld [vmem:[%s2057_s4 + $0x58] sm:$0xff]  ;;  %v1077_v40 = vld [vmem:[%s2055_s2 + $0x2] ss:$4 sm:$0x3] }
  0xf0   :  { %v409_v63 = vsub.f32 1.5, %v408_v56  ;;  %782 = vmatpush.bf16.msrb.mxu0 %v1085_v25  ;;  %801 = vmatpush.bf16.msrb.mxu1 %v1149_v34  ;;  %v536_v8 = vpack.c.bf16 %v530_v59, %v528_v58  ;;  %v537_v9 = vpack.c.bf16 %v531_v2, %v529_v16  ;;  %v482_v21 = vsel %vm427_vm2, %v464_v24, %v478_v28  ;;  %v1328_v25 = vld [vmem:[%s2057_s4 + $0x40] sm:$0xff]  ;;  %v1321_v34 = vld [vmem:[%s2057_s4 + $0x8] sm:$0xff] }
  0xf1   :  { %v490_v27 = vsub.f32 %v1918_v5, %v482_v21  ;;  %v574_v6 = vperm.slane %v1077_v40, 1  ;;  %v573_v58 = vperm.slane %v1077_v40, 0 }
  0xf2   :  { %954 = vmatpush.bf16.msrb.mxu2 %v1327_v54  ;;  %v410_v18 = vmul.f32 %v1355_v30, %v409_v63  ;;  %764 = vmatmul.bf16.vlgmr.msra.gmra.mxu3 %v537_v9  ;;  %v1320_v54 = vld [vmem:[%s2057_s4] sm:$0xff] }
  0xf3   :  { %973 = vmatpush.bf16.msrb.mxu3 %v1335_v10  ;;  %745 = vmatmul.bf16.vlgmr.msra.gmra.mxu2 %v536_v8  ;;  %v508_v46 = vperm.slane %v490_v27, 0 }
  0xf4   :  { %v414_v53 = vsel %vm413_vm8, %v1355_v30, %v410_v18  ;;  %783 = vmatmul.bf16.vlgmr.msrb.gmra.mxu0 %v536_v8  ;;  %802 = vmatmul.bf16.vlgmr.msrb.gmra.mxu1 %v537_v9  ;;  %v509_v30 = vperm.slane %v490_v27, 1 }
  0xf5   :  { %v426_v15 = vrot.slane %v414_v53, 7  ;;  %v524_v36 = vadd.f32 %v508_v46, %v496_v4 }
  0xf6   :  { %955 = vmatpush.bf16.msrb.mxu2 %v1326_v1 }
  0xf7   :  { %974 = vmatpush.bf16.msrb.mxu3 %v1334_v11  ;;  %v431_v50 = vsel %vm427_vm2, %v404_v29, %v426_v15  ;;  %v532_v43 = vmax.f32 %v524_v36, 0.0 }
  0xf8   :  { %v439_v22 = vmul.f32 %v431_v50, %v1682_v20  ;;  %v497_v20 = vmul.f32 %v449_v19, %v1551_v7 }
  0xfa   :  { %956 = vmatpush.bf16.msrb.mxu2 %v1325_v32  ;;  %v451_v47 = vperm.slane %v439_v22, 1  ;;  %v450_v33 = vperm.slane %v439_v22, 0  ;;  %v525_v3 = vadd.f32 %v509_v30, %v497_v20 }
  0xfb   :  { %975 = vmatpush.bf16.msrb.mxu3 %v1333_v42 }
  0xfc   :  { %v467_v61 = vmul.f32 %v451_v47, %v1747_v62  ;;  %v466_v0 = vmul.f32 %v450_v33, %v1639_v45  ;;  %v499_v62 = vmul.f32 %v451_v47, %v1597_v12  ;;  %v498_v37 = vmul.f32 %v450_v33, %v1560_v13  ;;  %v1324_v13 = vld [vmem:[%s2057_s4 + $0x20] sm:$0xff]  ;;  %v1330_v12 = vld [vmem:[%s2057_s4 + $0x50] sm:$0xff] }
  0xfd   :  { %v533_v57 = vmax.f32 %v525_v3, 0.0 }
  0xfe   :  { %v479_v26 = vrot.slane %v467_v61, 7  ;;  %957 = vmatpush.bf16.msrb.mxu2 %v1324_v13 }
  0xff   :  { %976 = vmatpush.bf16.msrb.mxu3 %v1332_v23 }
 0x100   :  { %v483_v31 = vsel %vm427_vm2, %v466_v0, %v479_v26 }
 0x101   :  { %v491_v35 = vsub.f32 %v1918_v5, %v483_v31  ;;  %v1323_v5 = vld [vmem:[%s2057_s4 + $0x18] sm:$0xff] }
 0x102   :  { %958 = vmatpush.bf16.msrb.mxu2 %v1323_v5 }
 0x103   :  { %v510_v39 = vperm.slane %v491_v35, 0  ;;  %v511_v45 = vperm.slane %v491_v35, 1  ;;  %977 = vmatpush.bf16.msrb.mxu3 %v1331_v44 }
 0x105   :  { %v526_v41 = vadd.f32 %v510_v39, %v498_v37  ;;  %v527_v60 = vadd.f32 %v511_v45, %v499_v62 }
 0x106   :  { %959 = vmatpush.bf16.msrb.mxu2 %v1322_v51 }
 0x107   :  { %v534_v38 = vmax.f32 %v526_v41, 0.0  ;;  %v535_v7 = vmax.f32 %v527_v60, 0.0  ;;  %978 = vmatpush.bf16.msrb.mxu3 %v1330_v12  ;;  %v1337_v41 = vld [vmem:[%s2055_s2 + $0x3] ss:$0 sm:$0xff] }
 0x109   :  { %v538_v19 = vpack.c.bf16 %v534_v38, %v532_v43  ;;  %v539_v48 = vpack.c.bf16 %v535_v7, %v533_v57 }
 0x10a   :  { %960 = vmatpush.bf16.msrb.mxu2 %v1321_v34 }
 0x10b   :  { %750 = vmatmul.bf16.gmra.mxu2 %v538_v19  ;;  %769 = vmatmul.bf16.gmra.mxu3 %v539_v48 }
 0x10c   :  { %788 = vmatmul.bf16.gmra.mxu0 %v538_v19  ;;  %807 = vmatmul.bf16.gmra.mxu1 %v539_v48 }
 0x10d   :  { %979 = vmatpush.bf16.msrb.mxu3 %v1329_v49 }
 0x10e   :  { %961 = vmatpush.bf16.msrb.mxu2 %v1320_v54 }
 0x111   :  { %980 = vmatpush.bf16.msrb.mxu3 %v1328_v25 }
 0x171   :  { %v784_v52 = vpop.f32.mrf.mxu0  ;;  %v803_v10 = vpop.f32.mrf.mxu1 }
 0x172   :  { %v785_v55 = vadd.f32 %v784_v52, %v574_v6 }
 0x174   :  { %v804_v16 = vadd.f32 %v803_v10, %v785_v55 }
 0x175   :  { %v765_v1 = vpop.f32.mrf.mxu3 }
 0x176   :  { %v746_v56 = vpop.f32.mrf.mxu2  ;;  %v814_v17 = vmax.f32 %v804_v16, 0.0 }
 0x177   :  { %v747_v63 = vadd.f32 %v746_v56, %v573_v58 }
 0x179   :  { %v786_v59 = vpop.f32.mrf.mxu0  ;;  %v805_v8 = vpop.f32.mrf.mxu1  ;;  %v766_v18 = vadd.f32 %v765_v1, %v747_v63 }
 0x17a   :  { %v787_v2 = vadd.f32 %v786_v59, %v574_v6 }
 0x17b   :  { %v813_v24 = vmax.f32 %v766_v18, 0.0 }
 0x17c   :  { %v806_v9 = vadd.f32 %v805_v8, %v787_v2 }
 0x17d   :  { %v767_v53 = vpop.f32.mrf.mxu3 }
 0x17e   :  { %v816_v11 = vmax.f32 %v806_v9, 0.0  ;;  %v748_v14 = vpop.f32.mrf.mxu2 }
 0x17f   :  { %v749_v32 = vadd.f32 %v748_v14, %v573_v58 }
 0x180   :  { %v822_v28 = vpack.c.bf16 %v816_v11, %v814_v17 }
 0x181   :  { %v768_v15 = vadd.f32 %v767_v53, %v749_v32 }
 0x182   :  { %981 = vmatmul.bf16.vlgmr.msrb.gmra.mxu3 %v822_v28 }
 0x183   :  { %v815_v42 = vmax.f32 %v768_v15, 0.0 }
 0x185   :  { %v821_v29 = vpack.c.bf16 %v815_v42, %v813_v24 }
 0x187   :  { %962 = vmatmul.bf16.vlgmr.msrb.gmra.mxu2 %v821_v29 }
 0x189   :  { %v789_v50 = vpop.f32.mrf.mxu0  ;;  %v808_v21 = vpop.f32.mrf.mxu1 }
 0x18a   :  { %v790_v22 = vadd.f32 %v789_v50, %v574_v6 }
 0x18c   :  { %v809_v27 = vadd.f32 %v808_v21, %v790_v22 }
 0x18e   :  { %v751_v23 = vpop.f32.mrf.mxu2  ;;  %v770_v47 = vpop.f32.mrf.mxu3  ;;  %v818_v30 = vmax.f32 %v809_v27, 0.0 }
 0x18f   :  { %v752_v26 = vadd.f32 %v751_v23, %v573_v58 }
 0x191   :  { %v791_v33 = vpop.f32.mrf.mxu0  ;;  %v810_v0 = vpop.f32.mrf.mxu1  ;;  %v771_v4 = vadd.f32 %v770_v47, %v752_v26 }
 0x192   :  { %v792_v61 = vadd.f32 %v791_v33, %v574_v6 }
 0x193   :  { %v817_v37 = vmax.f32 %v771_v4, 0.0 }
 0x194   :  { %v811_v46 = vadd.f32 %v810_v0, %v792_v61 }
 0x196   :  { %v820_v20 = vmax.f32 %v811_v46, 0.0  ;;  %v753_v31 = vpop.f32.mrf.mxu2  ;;  %v772_v36 = vpop.f32.mrf.mxu3 }
 0x197   :  { %v754_v35 = vadd.f32 %v753_v31, %v573_v58 }
 0x198   :  { %v824_v3 = vpack.c.bf16 %v820_v20, %v818_v30 }
 0x199   :  { %v773_v62 = vadd.f32 %v772_v36, %v754_v35 }
 0x19a   :  { %986 = vmatmul.bf16.gmra.mxu3 %v824_v3 }
 0x19b   :  { %v819_v39 = vmax.f32 %v773_v62, 0.0 }
 0x19d   :  { %v823_v45 = vpack.c.bf16 %v819_v39, %v817_v37 }
 0x19f   :  { %967 = vmatmul.bf16.gmra.mxu2 %v823_v45 }
 0x205   :  { %v982_v60 = vpop.f32.mrf.mxu3 }
 0x20a   :  { %v963_v43 = vpop.f32.mrf.mxu2 }
 0x20b   :  { %v964_v38 = vadd.f32 %v1337_v41, %v963_v43 }
 0x20d   :  { %v983_v57 = vadd.f32 %v982_v60, %v964_v38  ;;  %v984_v48 = vpop.f32.mrf.mxu3 }
 0x20f   :  { %1356 = vtanh.f32 %v983_v57 }
 0x212   :  { %v965_v7 = vpop.f32.mrf.mxu2 }
 0x213   :  { %v966_v19 = vadd.f32 %v1337_v41, %v965_v7 }
 0x215   :  { %v1357_v44 = vpop.eup %1356  ;;  %v985_v13 = vadd.f32 %v984_v48, %v966_v19 }
 0x216   :  { %996 = vst [vmem:[%s2058_s5] sm:$0xff] %v1357_v44 }
 0x217   :  { %1358 = vtanh.f32 %v985_v13 }
 0x21d   :  { %v1359_v12 = vpop.eup %1358  ;;  %v987_v5 = vpop.f32.mrf.mxu3 }
 0x21e   :  { %997 = vst [vmem:[%s2058_s5 + $0x8] sm:$0xff] %v1359_v12 }
 0x222   :  { %v968_v49 = vpop.f32.mrf.mxu2 }
 0x223   :  { %v969_v51 = vadd.f32 %v1337_v41, %v968_v49 }
 0x225   :  { %v988_v25 = vadd.f32 %v987_v5, %v969_v51  ;;  %v989_v40 = vpop.f32.mrf.mxu3 }
 0x227   :  { %1360 = vtanh.f32 %v988_v25 }
 0x22a   :  { %v970_v34 = vpop.f32.mrf.mxu2 }
 0x22b   :  { %v971_v54 = vadd.f32 %v1337_v41, %v970_v34 }
 0x22d   :  { %v1361_v52 = vpop.eup %1360  ;;  %v990_v10 = vadd.f32 %v989_v40, %v971_v54 }
 0x22e   :  { %998 = vst [vmem:[%s2058_s5 + $0x10] sm:$0xff] %v1361_v52 }
 0x22f   :  { %1362 = vtanh.f32 %v990_v10 }
 0x235   :  { %v1363_v6 = vpop.eup %1362 }
 0x236   :  { %999 = vst [vmem:[%s2058_s5 + $0x18] sm:$0xff] %v1363_v6 }

</bundles_post_ra>
